<compile_context>
chip_gen: v5e
topology: v5e:2x2
jax: 0.10.0
libtpu: 0.0.40
codegen_flags: <defaults>
</compile_context>

<pallas_src>
import jax
import jax.numpy as jnp
from jax import lax
from jax.experimental import pallas as pl
from jax.experimental.pallas import tpu as pltpu

LANE = 128


def _cdiv(a, b):
    return -(-a // b)


def _round_up(v, m):
    return _cdiv(v, m) * m


def _choose_tile(M, H, itemsize, *, x_buffer_bytes):
    """Pick (TM, n_tiles) from a VMEM byte budget, minimizing padding."""
    # VMEM (and, worst case, HBM) lane-pads the minor H dim toward 128.
    padded_row_bytes = _round_up(H, LANE) * itemsize
    tokens_budget = max(LANE, (x_buffer_bytes // padded_row_bytes) // LANE * LANE)
    n = max(1, _cdiv(M, tokens_budget))
    # Keep >=2 grid steps when there is enough work: lets the "parallel" axis
    # shard across v7x's two TensorCores instead of collapsing onto one.
    if n == 1 and M > 4 * LANE:
        n = 2
    tm = _round_up(_cdiv(M, n), LANE)   # spread M evenly -> <1 lane-tile waste
    n = _cdiv(M, tm)
    return tm, n


def _linear_t_kernel(b_ref, w_ref, x_ref, o_ref):
    # b_ref: (T, 1)  f32 VMEM (bias column)
    # w_ref: (T, H)  VMEM (natural nn.Linear layout; resident across steps)
    # x_ref: (TM, H) VMEM (one tile of tokens)
    # o_ref: (T, TM) VMEM (transposed, lane-dense output tile)
    acc = lax.dot_general(
        w_ref[...], x_ref[...],
        dimension_numbers=(((1,), (1,)), ((), ())),   # contract H on both sides
        preferred_element_type=jnp.float32,
    )  # (T, TM): token dim on lanes
    # Single broadcast add + one unmasked full-tile store (no per-row loop).
    o_ref[...] = (acc + b_ref[...]).astype(o_ref.dtype)


def time_log_model_forward(x, weight, bias, *,
                           x_buffer_bytes=6 * 1024 * 1024,
                           pallas_min_tokens=1024):
    """x: (B, S, H); weight: (T, H); bias: (T,).  Returns (B, S, T)."""
    B, S, H = x.shape
    T = weight.shape[0]
    M = B * S

    # For tiny problems a standalone memory-streaming kernel cannot beat the
    # fused XLA op (launch + pad-to-128 dominate) -- fall back.
    if M < pallas_min_tokens:
        return x @ weight.T + bias

    itemsize = jnp.dtype(x.dtype).itemsize
    TM, n_tiles = _choose_tile(M, H, itemsize, x_buffer_bytes=x_buffer_bytes)
    M_pad = n_tiles * TM

    x2d = x.reshape(M, H)
    if M_pad != M:
        x2d = jnp.pad(x2d, ((0, M_pad - M), (0, 0)))
    bias2d = bias.reshape(T, 1)

    out_t = pl.pallas_call(
        _linear_t_kernel,
        out_shape=jax.ShapeDtypeStruct((T, M_pad), x.dtype),
        grid_spec=pltpu.PrefetchScalarGridSpec(
            num_scalar_prefetch=0,
            grid=(n_tiles,),
            in_specs=[
                # bias column: tiny VMEM block, same every step
                pl.BlockSpec((T, 1), lambda i: (0, 0)),
                # weight: whole (T, H); constant index -> stays resident
                pl.BlockSpec((T, H), lambda i: (0, 0)),
                # x: (TM, H) tile marching down the token dim
                pl.BlockSpec((TM, H), lambda i: (i, 0)),
            ],
            # transposed output: token dim on lanes -> lane-dense stores,
            # tiny output buffers and HBM writeback
            out_specs=pl.BlockSpec((T, TM), lambda i: (0, i)),
        ),
        compiler_params=pltpu.CompilerParams(
            dimension_semantics=("parallel",),       # shard tiles across TCs
            vmem_limit_bytes=32 * 1024 * 1024,       # headroom for v5e's 16 MiB default
        ),
        cost_estimate=pl.CostEstimate(
            flops=2 * M_pad * H * T,
            transcendentals=0,
            bytes_accessed=itemsize * (M_pad * H + T * H + T + T * M_pad),
        ),
    )(bias2d, weight, x2d)

    # Layout plumbing back to the PyTorch output shape (B, S, T); touches only
    # M*T elements.
    return out_t[:, :M].T.reshape(B, S, T)


if __name__ == "__main__":
    # Module hyperparams (matching TimeLogModel.__init__ defaults)
    hidden = 32
    time_size = 1

    key = jax.random.PRNGKey(0)
    k_x, k_w, k_b = jax.random.split(key, 3)

    # Deterministic parameter init mirroring nn.Linear's uniform(-1/sqrt(H), 1/sqrt(H))
    bound = 1.0 / (hidden ** 0.5)
    weight = jax.random.uniform(k_w, (time_size, hidden), dtype=jnp.float32,
                                minval=-bound, maxval=bound)
    bias = jax.random.uniform(k_b, (time_size,), dtype=jnp.float32,
                              minval=-bound, maxval=bound)

    # 1) Small demo shape (batch=2, seq=8, hidden=32); force the Pallas path so
    #    the kernel itself is exercised (the size gate would otherwise route
    #    this tiny M=16 case to plain XLA).
    batch, seq = 2, 8
    x = jax.random.normal(k_x, (batch, seq, hidden), dtype=jnp.float32)
    y = jax.block_until_ready(
        time_log_model_forward(x, weight, bias, pallas_min_tokens=0))
    y_ref = x @ weight.T + bias
    assert y.shape == (batch, seq, time_size)
    assert jnp.allclose(y, y_ref, atol=1e-5, rtol=1e-5)

    # 2) Multi-tile path with a ragged token count (exercises the >=2-tile grid
    #    and padding logic): M = 4*700 = 2800 tokens.
    x2 = jax.random.normal(jax.random.PRNGKey(1), (4, 700, hidden),
                           dtype=jnp.float32)
    y2 = jax.block_until_ready(
        time_log_model_forward(x2, weight, bias, pallas_min_tokens=0))
    y2_ref = x2 @ weight.T + bias
    assert y2.shape == (4, 700, time_size)
    assert jnp.allclose(y2, y2_ref, atol=1e-5, rtol=1e-5)

    print("KERNEL_OK")
</pallas_src>

<mosaic_0001>
module attributes {stable_mosaic.version = 11 : i64} {
  func.func @_linear_t_kernel(%arg0: i32, %arg1: memref<1x1xf32, #tpu.memory_space<vmem>>, %arg2: memref<1x32xf32, #tpu.memory_space<vmem>>, %arg3: memref<128x32xf32, #tpu.memory_space<vmem>>, %arg4: memref<1x128xf32, #tpu.memory_space<vmem>>) attributes {dimension_semantics = [#tpu.dimension_semantics<parallel>], iteration_bounds = array<i64: 1>, scalar_prefetch = 0 : i64, scratch_operands = 0 : i64, tpu.core_type = #tpu.core_type<tc>, window_params = [{pipeline_mode = #tpu.pipeline_mode<synchronous>, transform_indices = @transform_0, window_bounds = array<i64: 1, 1>}, {pipeline_mode = #tpu.pipeline_mode<synchronous>, transform_indices = @transform_1, window_bounds = array<i64: 1, 32>}, {transform_indices = @transform_2, window_bounds = array<i64: 128, 32>}, {transform_indices = @transform_3, window_bounds = array<i64: 1, 128>}]} {
    %c0 = arith.constant 0 : index
    %c0_0 = arith.constant 0 : index
    %0 = vector.load %arg2[%c0, %c0_0] : memref<1x32xf32, #tpu.memory_space<vmem>>, vector<1x32xf32>
    %c0_1 = arith.constant 0 : index
    %c0_2 = arith.constant 0 : index
    %1 = vector.load %arg3[%c0_1, %c0_2] : memref<128x32xf32, #tpu.memory_space<vmem>>, vector<128x32xf32>
    %cst = arith.constant dense<0.000000e+00> : vector<1x128xf32>
    %2 = tpu.matmul %0, %1, %cst {dimension_numbers = #tpu.dot_dimension_numbers<[1], [1], [0], [0], [0, 0, 1, 0], [], []>} : vector<1x32xf32>, vector<128x32xf32>, vector<1x128xf32> -> vector<1x128xf32>
    %c0_3 = arith.constant 0 : index
    %c0_4 = arith.constant 0 : index
    %3 = vector.load %arg1[%c0_3, %c0_4] : memref<1x1xf32, #tpu.memory_space<vmem>>, vector<1x1xf32>
    %4 = vector.broadcast %3 : vector<1x1xf32> to vector<1x128xf32>
    %5 = arith.addf %2, %4 : vector<1x128xf32>
    %c0_5 = arith.constant 0 : index
    %c0_6 = arith.constant 0 : index
    %6 = vector.load %arg4[%c0_5, %c0_6] : memref<1x128xf32, #tpu.memory_space<vmem>>, vector<1x128xf32>
    tpu.vector_store %arg4[%c0_5, %c0_6], %5 {strides = array<i32>} : memref<1x128xf32, #tpu.memory_space<vmem>>, vector<1x128xf32>,
    return
  }
  func.func @transform_0(%arg0: i32) -> (i32, i32) {
    %c0_i32 = arith.constant 0 : i32
    %c0_i32_0 = arith.constant 0 : i32
    %c0_i32_1 = arith.constant 0 : i32
    return %c0_i32, %c0_i32_0 : i32, i32
  }
  func.func @transform_1(%arg0: i32) -> (i32, i32) {
    %c0_i32 = arith.constant 0 : i32
    %c0_i32_0 = arith.constant 0 : i32
    %c0_i32_1 = arith.constant 0 : i32
    return %c0_i32, %c0_i32_0 : i32, i32
  }
  func.func @transform_2(%arg0: i32) -> (i32, i32) {
    %c0_i32 = arith.constant 0 : i32
    %c0_i32_0 = arith.constant 0 : i32
    return %arg0, %c0_i32 : i32, i32
  }
  func.func @transform_3(%arg0: i32) -> (i32, i32) {
    %c0_i32 = arith.constant 0 : i32
    %c0_i32_0 = arith.constant 0 : i32
    return %c0_i32, %arg0 : i32, i32
  }
}

</mosaic_0001>

<bundles_post_ra>
// kernel: tpu_custom_call.1
= control target key start
LH: loop header
LB: loop body
LE: loop exit
PB: predicated region body
PF: predicated region fallthrough
CT: control target
= control target key end

     0   :  { %s272_s0 = inlined_call_operand.<no memory space> [shape: f32[1,1], index: 0, kind: input, shape index: {}]   ;;  %s273_s1 = inlined_call_operand.vmem [shape: f32[1,32], index: 1, kind: input, shape index: {}]   ;;  %s274_s2 = inlined_call_operand.vmem [shape: f32[128,32], index: 2, kind: input, shape index: {}]   ;;  %s275_s3 = inlined_call_operand.hbm [shape: f32[1,128], index: 3, kind: output, shape index: {}]  }
   0x1   :  { %v8_v0 = vstv %s272_s0 }
   0x2   :  { %9 = vst [vmem:[#allocation2] sm:$0x1] %v8_v0 }
   0x3   :  { %v33_v1 = vld [vmem:[%s274_s2 + $0x78] sm:$0xff]  ;;  %vm41_vm0 = vcmask 261120   ;;  %v32_v2 = vld [vmem:[%s274_s2 + $0x70] sm:$0xff] }
   0x4   :  { %130 = vmatpush.xpose.msk.msra.mxu0 %vm41_vm0, %v33_v1 }
   0x5   :  { %10 = vsyncpa [#allocation4], 0  ;;  %v31_v3 = vld [vmem:[%s274_s2 + $0x68] sm:$0xff]  ;;  %v30_v4 = vld [vmem:[%s274_s2 + $0x60] sm:$0xff]  ;;  %v176_v11 = vmov 0   ;;  %s177_s0 = smov [#allocation3]  }
   0x6   :  { %v29_v5 = vld [vmem:[%s274_s2 + $0x58] sm:$0xff]  ;;  %v28_v6 = vld [vmem:[%s274_s2 + $0x50] sm:$0xff]  ;;  %v27_v7 = vld [vmem:[%s274_s2 + $0x48] sm:$0xff]  ;;  %149 = vset.pattern.permute.xlu0 %v176_v11  ;;  %s119_s20 = sshll.u32 %s177_s0, 4  ;;  %s121_s23 = sshll.u32 %s275_s3, 4  ;;  %s120_s20 = int_to_ptr.vmem [resolvable:$true] %s119_s20  ;;  %s122_s23 = int_to_ptr.hbm [resolvable:$true] %s121_s23 }
   0x7   :  { %v26_v8 = vld [vmem:[%s274_s2 + $0x40] sm:$0xff]  ;;  %v25_v9 = vld [vmem:[%s274_s2 + $0x38] sm:$0xff]  ;;  %v24_v12 = vld [vmem:[%s274_s2 + $0x30] sm:$0xff] }
   0x8   :  { %131 = vmatpush.xpose.msk.msra.mxu0 %vm41_vm0, %v32_v2  ;;  %v23_v13 = vld [vmem:[%s274_s2 + $0x28] sm:$0xff]  ;;  %v22_v14 = vld [vmem:[%s274_s2 + $0x20] sm:$0xff]  ;;  %v21_v15 = vld [vmem:[%s274_s2 + $0x18] sm:$0xff] }
   0x9   :  { %v34_v10 = vld [vmem:[#allocation2] sm:$0x1]  ;;  %v20_v16 = vld [vmem:[%s274_s2 + $0x10] sm:$0xff]  ;;  %v19_v17 = vld [vmem:[%s274_s2 + $0x8] sm:$0xff] }
   0xa   :  { %37 = vperm.xlu0 %149, %v34_v10   ;;  %v18_v18 = vld [vmem:[%s274_s2] sm:$0xff] }
   0xb   :  { %v17_v19 = vld [vmem:[%s273_s1] sm:$0x1] }
   0xc   :  { %132 = vmatpush.xpose.msk.msra.mxu0 %vm41_vm0, %v31_v3 }
  0x10   :  { %133 = vmatpush.xpose.msk.msra.mxu0 %vm41_vm0, %v30_v4 }
  0x14   :  { %134 = vmatpush.xpose.msk.msra.mxu0 %vm41_vm0, %v29_v5 }
  0x18   :  { %135 = vmatpush.xpose.msk.msra.mxu0 %vm41_vm0, %v28_v6 }
  0x1c   :  { %136 = vmatpush.xpose.msk.msra.mxu0 %vm41_vm0, %v27_v7 }
  0x20   :  { %137 = vmatpush.xpose.msk.msra.mxu0 %vm41_vm0, %v26_v8 }
  0x24   :  { %138 = vmatpush.xpose.msk.msra.mxu0 %vm41_vm0, %v25_v9 }
  0x28   :  { %139 = vmatpush.xpose.msk.msra.mxu0 %vm41_vm0, %v24_v12 }
  0x2c   :  { %140 = vmatpush.xpose.msk.msra.mxu0 %vm41_vm0, %v23_v13 }
  0x30   :  { %141 = vmatpush.xpose.msk.msra.mxu0 %vm41_vm0, %v22_v14 }
  0x34   :  { %142 = vmatpush.xpose.msk.msra.mxu0 %vm41_vm0, %v21_v15 }
  0x38   :  { %143 = vmatpush.xpose.msk.msra.mxu0 %vm41_vm0, %v20_v16 }
  0x3c   :  { %144 = vmatpush.xpose.msk.msra.mxu0 %vm41_vm0, %v19_v17 }
  0x40   :  { %145 = vmatpush.xpose.msk.msra.mxu0 %vm41_vm0, %v18_v18 }
  0x43   :  { %146 = vmatmul.msk.f32.vlgmr.msra.gmra.mxu0 %vm41_vm0, %v17_v19 }
  0x7c   :  { %v38_v20 = vpop.permute.xlu0 %37 }
  0x7d   :  { %v40_v21 = vperm.slane %v38_v20, 0 }
  0xc0   :  { %v110_v22 = vpop.f32.mrf.mxu0 }
  0xc1   :  { %v111_v23 = vadd.f32 %v110_v22, %v40_v21 }
  0xc3   :  { %113 = vst [vmem:[#allocation3] sm:$0x1] %v111_v23 }
  0xc4   :  { %124 = dma.vmem_to_hbm [thread:$0]  %s120_s20, 16, %s122_s23, [#allocation4]  }
  0xc5   :  { %174 = dma.done.wait [#allocation4], 16  }
  0xc6   :  { %175 = vsyncadd [#allocation4], 4294967280 }
  0xc7   :  { %129 = vsyncpa [#allocation4], 1 }

</bundles_post_ra>
